<compile_context>
chip_gen: v5e
topology: v5e:2x2
jax: 0.10.0
libtpu: 0.0.40
codegen_flags: <defaults>
</compile_context>

<pallas_src>
import jax
import jax.numpy as jnp
import numpy as np
from jax.experimental import pallas as pl
from jax.experimental.pallas import tpu as pltpu


def lstm_decoder_kernel(enc_ref, x_ref, h_ref, c_ref,
                        w1_ref, w2_ref, v_ref,
                        wih_ref, whh_ref, b_ref,
                        h_out_ref, c_out_ref, attw_ref):
    BB, S, H = enc_ref.shape
    U = w1_ref.shape[1]

    enc = enc_ref[...]                       # (BB, S, H)
    ht = h_ref[0]                            # (BB, H)   h_ref block is (1, BB, H)
    ct = c_ref[0]                            # (BB, H)
    x = x_ref[:, 0, :]                       # (BB, H)   x_ref block is (BB, 1, H)

    # ---- attention: uj = V(tanh(W1 enc + W2 ht)); batch folded into M ----
    u = jnp.dot(enc.reshape(BB * S, H), w1_ref[...],
                preferred_element_type=jnp.float32)                   # (BB*S, U)
    ht_u = jnp.dot(ht, w2_ref[...],
                   preferred_element_type=jnp.float32)                # (BB, U)
    u = jnp.tanh(u.reshape(BB, S, U) + ht_u[:, None, :])              # (BB, S, U)

    # raw logits, lane-dense: sequence axis S is the last (lane) axis.
    v = v_ref[...]                                                    # (1, U)
    logits = jnp.sum(u * v, axis=-1)                                  # (BB, S)

    # softmax over the sequence (lane) axis
    m = jnp.max(logits, axis=-1, keepdims=True)
    e = jnp.exp(logits - m)
    aj = e / jnp.sum(e, axis=-1, keepdims=True)                       # (BB, S)

    # context vector via batched MXU matmul: (BB,1,S) @ (BB,S,H) -> (BB,H)
    di = jnp.einsum("bqs,bsh->bqh", aj[:, None, :], enc,
                    preferred_element_type=jnp.float32)[:, 0, :]      # (BB, H)

    # ---- single-step LSTM cell; input = concat([di, x], -1) done as a
    #      split matmul (avoids an in-kernel concatenate) ----
    wih = wih_ref[...]                                                # (2H, 4H)
    gates = (jnp.dot(di, wih[:H, :], preferred_element_type=jnp.float32)
             + jnp.dot(x, wih[H:, :], preferred_element_type=jnp.float32)
             + jnp.dot(ht, whh_ref[...], preferred_element_type=jnp.float32)
             + b_ref[...])                                            # (BB, 4H)

    i_g = jax.nn.sigmoid(gates[:, 0 * H:1 * H])   # PyTorch gate order i,f,g,o
    f_g = jax.nn.sigmoid(gates[:, 1 * H:2 * H])
    g_g = jnp.tanh(gates[:, 2 * H:3 * H])
    o_g = jax.nn.sigmoid(gates[:, 3 * H:4 * H])
    c_new = f_g * ct + i_g * g_g
    h_new = o_g * jnp.tanh(c_new)

    h_out_ref[0] = h_new
    c_out_ref[0] = c_new
    attw_ref[...] = logits      # raw uj (pre-softmax), as returned by the module


def lstm_decoder_forward(params, x, hidden, encoder_out, *, batch_block=None):
    """x: (B,1,H); hidden: ((1,B,H),(1,B,H)); encoder_out: (B,S,H)."""
    h0, c0 = hidden
    B, S, H = encoder_out.shape
    U = params["w1"].shape[1]

    # Batch tile: big enough to fill MXU rows / amortize grid overhead.
    BB = min(B, 64) if batch_block is None else min(batch_block, B)
    grid = (pl.cdiv(B, BB),)

    enc_spec = pl.BlockSpec((BB, S, H), lambda b: (b, 0, 0))
    x_spec = pl.BlockSpec((BB, 1, H), lambda b: (b, 0, 0))
    hc_spec = pl.BlockSpec((1, BB, H), lambda b: (0, b, 0))     # (1,B,H) layout, no transpose
    attw_spec = pl.BlockSpec((BB, S), lambda b: (b, 0))         # lane-dense logits output

    def w2d(shp):
        return pl.BlockSpec(shp, lambda b: (0, 0))              # weights stay resident

    h_new, c_new, att_w = pl.pallas_call(
        lstm_decoder_kernel,
        out_shape=(jax.ShapeDtypeStruct((1, B, H), jnp.float32),
                   jax.ShapeDtypeStruct((1, B, H), jnp.float32),
                   jax.ShapeDtypeStruct((B, S), jnp.float32)),
        grid=grid,
        in_specs=[enc_spec, x_spec, hc_spec, hc_spec,             # enc, x, h, c
                  w2d((H, U)), w2d((H, U)), w2d((1, U)),          # W1, W2, V
                  w2d((2 * H, 4 * H)), w2d((H, 4 * H)),           # W_ih, W_hh
                  w2d((1, 4 * H))],                               # bias (ih+hh folded)
        out_specs=(hc_spec, hc_spec, attw_spec),
        compiler_params=pltpu.CompilerParams(
            dimension_semantics=("parallel",)),                   # megacore on v7x
    )(encoder_out, x, h0, c0,
      params["w1"], params["w2"], params["v"],
      params["wih"], params["whh"], params["b"])

    return (h_new, c_new), att_w


def init_params(key, H, U):
    """Deterministic synthetic parameters (PyTorch-like uniform init ranges)."""
    ks = jax.random.split(key, 7)
    k_att = 1.0 / np.sqrt(H)
    k_v = 1.0 / np.sqrt(U)
    k_lstm = 1.0 / np.sqrt(H)

    def uni(k, shp, lim):
        return jax.random.uniform(k, shp, jnp.float32, -lim, lim)

    return {
        # attention: torch weights are (U,H)/(1,U); stored transposed -> (H,U)/(1,U)
        "w1": uni(ks[0], (H, U), k_att),
        "w2": uni(ks[1], (H, U), k_att),
        "v": uni(ks[2], (1, U), k_v),
        # LSTM: weight_ih (4H,2H) -> (2H,4H); weight_hh (4H,H) -> (H,4H);
        #       b = bias_ih + bias_hh folded together, shape (1,4H)
        "wih": uni(ks[3], (2 * H, 4 * H), k_lstm),
        "whh": uni(ks[4], (H, 4 * H), k_lstm),
        "b": uni(ks[5], (1, 4 * H), k_lstm) + uni(ks[6], (1, 4 * H), k_lstm),
    }


def reference_forward(params, x, hidden, encoder_out):
    """Pure-JAX reference mirroring the PyTorch module."""
    h0, c0 = hidden
    B, S, H = encoder_out.shape
    ht = h0[0]                                                   # (B, H)
    u = jnp.einsum("bsh,hu->bsu", encoder_out, params["w1"])
    u = u + (ht @ params["w2"])[:, None, :]
    u = jnp.tanh(u)
    uj = jnp.einsum("bsu,u->bs", u, params["v"][0])              # (B, S)
    aj = jax.nn.softmax(uj, axis=1)
    di = jnp.einsum("bs,bsh->bh", aj, encoder_out)               # (B, H)
    xin = jnp.concatenate([di, x[:, 0, :]], axis=-1)             # (B, 2H)
    gates = xin @ params["wih"] + ht @ params["whh"] + params["b"]
    i_g = jax.nn.sigmoid(gates[:, :H])
    f_g = jax.nn.sigmoid(gates[:, H:2 * H])
    g_g = jnp.tanh(gates[:, 2 * H:3 * H])
    o_g = jax.nn.sigmoid(gates[:, 3 * H:])
    c_new = f_g * c0[0] + i_g * g_g
    h_new = o_g * jnp.tanh(c_new)
    return (h_new[None], c_new[None]), uj


if __name__ == "__main__":
    B, S, H, U = 2, 8, 32, 10

    key = jax.random.PRNGKey(0)
    k_p, k_x, k_h, k_c, k_e = jax.random.split(key, 5)

    params = init_params(k_p, H, U)
    x = jax.random.normal(k_x, (B, 1, H), jnp.float32)
    h0 = jax.random.normal(k_h, (1, B, H), jnp.float32)
    c0 = jax.random.normal(k_c, (1, B, H), jnp.float32)
    encoder_out = jax.random.normal(k_e, (B, S, H), jnp.float32)

    (h_new, c_new), att_w = lstm_decoder_forward(params, x, (h0, c0), encoder_out)
    jax.block_until_ready((h_new, c_new, att_w))

    (h_ref, c_ref), att_ref = reference_forward(params, x, (h0, c0), encoder_out)
    assert h_new.shape == (1, B, H) and c_new.shape == (1, B, H)
    assert att_w.shape == (B, S)
    np.testing.assert_allclose(np.asarray(h_new), np.asarray(h_ref), rtol=1e-4, atol=1e-5)
    np.testing.assert_allclose(np.asarray(c_new), np.asarray(c_ref), rtol=1e-4, atol=1e-5)
    np.testing.assert_allclose(np.asarray(att_w), np.asarray(att_ref), rtol=1e-4, atol=1e-5)

    print("KERNEL_OK")
</pallas_src>

<mosaic_0001>
module attributes {stable_mosaic.version = 11 : i64} {
  func.func @lstm_decoder_kernel(%arg0: i32, %arg1: memref<2x8x32xf32, #tpu.memory_space<vmem>>, %arg2: memref<2x1x32xf32, #tpu.memory_space<vmem>>, %arg3: memref<1x2x32xf32, #tpu.memory_space<vmem>>, %arg4: memref<1x2x32xf32, #tpu.memory_space<vmem>>, %arg5: memref<32x10xf32, #tpu.memory_space<vmem>>, %arg6: memref<32x10xf32, #tpu.memory_space<vmem>>, %arg7: memref<1x10xf32, #tpu.memory_space<vmem>>, %arg8: memref<64x128xf32, #tpu.memory_space<vmem>>, %arg9: memref<32x128xf32, #tpu.memory_space<vmem>>, %arg10: memref<1x128xf32, #tpu.memory_space<vmem>>, %arg11: memref<1x2x32xf32, #tpu.memory_space<vmem>>, %arg12: memref<1x2x32xf32, #tpu.memory_space<vmem>>, %arg13: memref<2x8xf32, #tpu.memory_space<vmem>>) attributes {dimension_semantics = [#tpu.dimension_semantics<parallel>], iteration_bounds = array<i64: 1>, scalar_prefetch = 0 : i64, scratch_operands = 0 : i64, tpu.core_type = #tpu.core_type<tc>, window_params = [{transform_indices = @transform_0, window_bounds = array<i64: 2, 8, 32>}, {transform_indices = @transform_1, window_bounds = array<i64: 2, 1, 32>}, {transform_indices = @transform_2, window_bounds = array<i64: 1, 2, 32>}, {transform_indices = @transform_3, window_bounds = array<i64: 1, 2, 32>}, {pipeline_mode = #tpu.pipeline_mode<synchronous>, transform_indices = @transform_4, window_bounds = array<i64: 32, 10>}, {pipeline_mode = #tpu.pipeline_mode<synchronous>, transform_indices = @transform_5, window_bounds = array<i64: 32, 10>}, {pipeline_mode = #tpu.pipeline_mode<synchronous>, transform_indices = @transform_6, window_bounds = array<i64: 1, 10>}, {pipeline_mode = #tpu.pipeline_mode<synchronous>, transform_indices = @transform_7, window_bounds = array<i64: 64, 128>}, {pipeline_mode = #tpu.pipeline_mode<synchronous>, transform_indices = @transform_8, window_bounds = array<i64: 32, 128>}, {pipeline_mode = #tpu.pipeline_mode<synchronous>, transform_indices = @transform_9, window_bounds = array<i64: 1, 128>}, {transform_indices = @transform_10, window_bounds = array<i64: 1, 2, 32>}, {transform_indices = @transform_11, window_bounds = array<i64: 1, 2, 32>}, {transform_indices = @transform_12, window_bounds = array<i64: 2, 8>}]} {
    %c0 = arith.constant 0 : index
    %c0_0 = arith.constant 0 : index
    %c0_1 = arith.constant 0 : index
    %0 = vector.load %arg1[%c0, %c0_0, %c0_1] : memref<2x8x32xf32, #tpu.memory_space<vmem>>, vector<2x8x32xf32>
    %c0_2 = arith.constant 0 : index
    %c0_3 = arith.constant 0 : index
    %c0_4 = arith.constant 0 : index
    %1 = vector.load %arg3[%c0_2, %c0_3, %c0_4] : memref<1x2x32xf32, #tpu.memory_space<vmem>>, vector<1x2x32xf32>
    %2 = vector.shape_cast %1 : vector<1x2x32xf32> to vector<2x32xf32>
    %c0_5 = arith.constant 0 : index
    %c0_6 = arith.constant 0 : index
    %c0_7 = arith.constant 0 : index
    %3 = vector.load %arg4[%c0_5, %c0_6, %c0_7] : memref<1x2x32xf32, #tpu.memory_space<vmem>>, vector<1x2x32xf32>
    %4 = vector.shape_cast %3 : vector<1x2x32xf32> to vector<2x32xf32>
    %c0_8 = arith.constant 0 : index
    %c0_9 = arith.constant 0 : index
    %c0_10 = arith.constant 0 : index
    %5 = vector.load %arg2[%c0_8, %c0_9, %c0_10] : memref<2x1x32xf32, #tpu.memory_space<vmem>>, vector<2x1x32xf32>
    %6 = vector.shape_cast %5 : vector<2x1x32xf32> to vector<2x32xf32>
    %7 = vector.shape_cast %0 : vector<2x8x32xf32> to vector<16x32xf32>
    %c0_11 = arith.constant 0 : index
    %c0_12 = arith.constant 0 : index
    %8 = vector.load %arg5[%c0_11, %c0_12] : memref<32x10xf32, #tpu.memory_space<vmem>>, vector<32x10xf32>
    %cst = arith.constant dense<0.000000e+00> : vector<16x10xf32>
    %9 = tpu.matmul %7, %8, %cst {dimension_numbers = #tpu.dot_dimension_numbers<[1], [0], [0], [1], [0, 0, 1, 1], [], []>} : vector<16x32xf32>, vector<32x10xf32>, vector<16x10xf32> -> vector<16x10xf32>
    %c0_13 = arith.constant 0 : index
    %c0_14 = arith.constant 0 : index
    %10 = vector.load %arg6[%c0_13, %c0_14] : memref<32x10xf32, #tpu.memory_space<vmem>>, vector<32x10xf32>
    %cst_15 = arith.constant dense<0.000000e+00> : vector<2x10xf32>
    %11 = tpu.matmul %2, %10, %cst_15 {dimension_numbers = #tpu.dot_dimension_numbers<[1], [0], [0], [1], [0, 0, 1, 1], [], []>} : vector<2x32xf32>, vector<32x10xf32>, vector<2x10xf32> -> vector<2x10xf32>
    %12 = vector.shape_cast %9 : vector<16x10xf32> to vector<2x8x10xf32>
    %13 = vector.shape_cast %11 : vector<2x10xf32> to vector<2x1x10xf32>
    %14 = vector.broadcast %13 : vector<2x1x10xf32> to vector<2x8x10xf32>
    %15 = arith.addf %12, %14 : vector<2x8x10xf32>
    %16 = math.tanh %15 : vector<2x8x10xf32>
    %c0_16 = arith.constant 0 : index
    %c0_17 = arith.constant 0 : index
    %17 = vector.load %arg7[%c0_16, %c0_17] : memref<1x10xf32, #tpu.memory_space<vmem>>, vector<1x10xf32>
    %18 = vector.shape_cast %17 : vector<1x10xf32> to vector<1x1x10xf32>
    %19 = vector.broadcast %18 : vector<1x1x10xf32> to vector<2x8x10xf32>
    %20 = arith.mulf %16, %19 : vector<2x8x10xf32>
    %cst_18 = arith.constant dense<0.000000e+00> : vector<2x8xf32>
    %21 = vector.multi_reduction <add>, %20, %cst_18 [2] : vector<2x8x10xf32> to vector<2x8xf32>
    %cst_19 = arith.constant dense<0xFF800000> : vector<2xf32>
    %22 = vector.multi_reduction <maximumf>, %21, %cst_19 [1] : vector<2x8xf32> to vector<2xf32>
    %23 = vector.shape_cast %22 : vector<2xf32> to vector<2x1xf32>
    %24 = vector.broadcast %23 : vector<2x1xf32> to vector<2x8xf32>
    %25 = arith.subf %21, %24 : vector<2x8xf32>
    %26 = math.exp %25 : vector<2x8xf32>
    %cst_20 = arith.constant dense<0.000000e+00> : vector<2xf32>
    %27 = vector.multi_reduction <add>, %26, %cst_20 [1] : vector<2x8xf32> to vector<2xf32>
    %28 = vector.shape_cast %27 : vector<2xf32> to vector<2x1xf32>
    %29 = vector.broadcast %28 : vector<2x1xf32> to vector<2x8xf32>
    %30 = arith.divf %26, %29 : vector<2x8xf32>
    %31 = vector.shape_cast %30 : vector<2x8xf32> to vector<2x1x8xf32>
    "tpu.trace_start"() <{level = 10 : i32, message = "bqs,bsh->bqh"}> : () -> ()
    %cst_21 = arith.constant dense<0.000000e+00> : vector<2x1x32xf32>
    %32 = tpu.matmul %31, %0, %cst_21 {dimension_numbers = #tpu.dot_dimension_numbers<[2], [1], [1], [2], [0, 0, 0, 1, 1, 2], [0], [0]>} : vector<2x1x8xf32>, vector<2x8x32xf32>, vector<2x1x32xf32> -> vector<2x1x32xf32>
    "tpu.trace_stop"() : () -> ()
    %33 = vector.shape_cast %32 : vector<2x1x32xf32> to vector<2x32xf32>
    %c0_22 = arith.constant 0 : index
    %c0_23 = arith.constant 0 : index
    %34 = vector.load %arg8[%c0_22, %c0_23] : memref<64x128xf32, #tpu.memory_space<vmem>>, vector<64x128xf32>
    %35 = vector.extract_strided_slice %34 {offsets = [0, 0], sizes = [32, 128], strides = [1, 1]} : vector<64x128xf32> to vector<32x128xf32>
    %cst_24 = arith.constant dense<0.000000e+00> : vector<2x128xf32>
    %36 = tpu.matmul %33, %35, %cst_24 {dimension_numbers = #tpu.dot_dimension_numbers<[1], [0], [0], [1], [0, 0, 1, 1], [], []>} : vector<2x32xf32>, vector<32x128xf32>, vector<2x128xf32> -> vector<2x128xf32>
    %37 = vector.extract_strided_slice %34 {offsets = [32, 0], sizes = [32, 128], strides = [1, 1]} : vector<64x128xf32> to vector<32x128xf32>
    %cst_25 = arith.constant dense<0.000000e+00> : vector<2x128xf32>
    %38 = tpu.matmul %6, %37, %cst_25 {dimension_numbers = #tpu.dot_dimension_numbers<[1], [0], [0], [1], [0, 0, 1, 1], [], []>} : vector<2x32xf32>, vector<32x128xf32>, vector<2x128xf32> -> vector<2x128xf32>
    %39 = arith.addf %36, %38 : vector<2x128xf32>
    %c0_26 = arith.constant 0 : index
    %c0_27 = arith.constant 0 : index
    %40 = vector.load %arg9[%c0_26, %c0_27] : memref<32x128xf32, #tpu.memory_space<vmem>>, vector<32x128xf32>
    %cst_28 = arith.constant dense<0.000000e+00> : vector<2x128xf32>
    %41 = tpu.matmul %2, %40, %cst_28 {dimension_numbers = #tpu.dot_dimension_numbers<[1], [0], [0], [1], [0, 0, 1, 1], [], []>} : vector<2x32xf32>, vector<32x128xf32>, vector<2x128xf32> -> vector<2x128xf32>
    %42 = arith.addf %39, %41 : vector<2x128xf32>
    %c0_29 = arith.constant 0 : index
    %c0_30 = arith.constant 0 : index
    %43 = vector.load %arg10[%c0_29, %c0_30] : memref<1x128xf32, #tpu.memory_space<vmem>>, vector<1x128xf32>
    %44 = vector.broadcast %43 : vector<1x128xf32> to vector<2x128xf32>
    %45 = arith.addf %42, %44 : vector<2x128xf32>
    %46 = vector.extract_strided_slice %45 {offsets = [0, 0], sizes = [2, 32], strides = [1, 1]} : vector<2x128xf32> to vector<2x32xf32>
    %47 = arith.negf %46 : vector<2x32xf32>
    %48 = math.exp %47 : vector<2x32xf32>
    %cst_31 = arith.constant 1.000000e+00 : f32
    %49 = vector.broadcast %cst_31 : f32 to vector<2x32xf32>
    %50 = arith.addf %49, %48 : vector<2x32xf32>
    %51 = arith.divf %49, %50 : vector<2x32xf32>
    %52 = vector.extract_strided_slice %45 {offsets = [0, 32], sizes = [2, 32], strides = [1, 1]} : vector<2x128xf32> to vector<2x32xf32>
    %53 = arith.negf %52 : vector<2x32xf32>
    %54 = math.exp %53 : vector<2x32xf32>
    %cst_32 = arith.constant 1.000000e+00 : f32
    %55 = vector.broadcast %cst_32 : f32 to vector<2x32xf32>
    %56 = arith.addf %55, %54 : vector<2x32xf32>
    %57 = arith.divf %55, %56 : vector<2x32xf32>
    %58 = vector.extract_strided_slice %45 {offsets = [0, 64], sizes = [2, 32], strides = [1, 1]} : vector<2x128xf32> to vector<2x32xf32>
    %59 = math.tanh %58 : vector<2x32xf32>
    %60 = vector.extract_strided_slice %45 {offsets = [0, 96], sizes = [2, 32], strides = [1, 1]} : vector<2x128xf32> to vector<2x32xf32>
    %61 = arith.negf %60 : vector<2x32xf32>
    %62 = math.exp %61 : vector<2x32xf32>
    %cst_33 = arith.constant 1.000000e+00 : f32
    %63 = vector.broadcast %cst_33 : f32 to vector<2x32xf32>
    %64 = arith.addf %63, %62 : vector<2x32xf32>
    %65 = arith.divf %63, %64 : vector<2x32xf32>
    %66 = arith.mulf %57, %4 : vector<2x32xf32>
    %67 = arith.mulf %51, %59 : vector<2x32xf32>
    %68 = arith.addf %66, %67 : vector<2x32xf32>
    %69 = math.tanh %68 : vector<2x32xf32>
    %70 = arith.mulf %65, %69 : vector<2x32xf32>
    %c0_34 = arith.constant 0 : index
    %c0_35 = arith.constant 0 : index
    %c0_36 = arith.constant 0 : index
    %71 = vector.load %arg11[%c0_34, %c0_35, %c0_36] : memref<1x2x32xf32, #tpu.memory_space<vmem>>, vector<1x2x32xf32>
    %72 = vector.shape_cast %71 : vector<1x2x32xf32> to vector<2x32xf32>
    %73 = vector.shape_cast %70 : vector<2x32xf32> to vector<1x2x32xf32>
    tpu.vector_store %arg11[%c0_34, %c0_35, %c0_36], %73 {strides = array<i32>} : memref<1x2x32xf32, #tpu.memory_space<vmem>>, vector<1x2x32xf32>,
    %c0_37 = arith.constant 0 : index
    %c0_38 = arith.constant 0 : index
    %c0_39 = arith.constant 0 : index
    %74 = vector.load %arg12[%c0_37, %c0_38, %c0_39] : memref<1x2x32xf32, #tpu.memory_space<vmem>>, vector<1x2x32xf32>
    %75 = vector.shape_cast %74 : vector<1x2x32xf32> to vector<2x32xf32>
    %76 = vector.shape_cast %68 : vector<2x32xf32> to vector<1x2x32xf32>
    tpu.vector_store %arg12[%c0_37, %c0_38, %c0_39], %76 {strides = array<i32>} : memref<1x2x32xf32, #tpu.memory_space<vmem>>, vector<1x2x32xf32>,
    %c0_40 = arith.constant 0 : index
    %c0_41 = arith.constant 0 : index
    %77 = vector.load %arg13[%c0_40, %c0_41] : memref<2x8xf32, #tpu.memory_space<vmem>>, vector<2x8xf32>
    tpu.vector_store %arg13[%c0_40, %c0_41], %21 {strides = array<i32>} : memref<2x8xf32, #tpu.memory_space<vmem>>, vector<2x8xf32>,
    return
  }
  func.func @transform_0(%arg0: i32) -> (i32, i32, i32) {
    %c0_i32 = arith.constant 0 : i32
    %c0_i32_0 = arith.constant 0 : i32
    %c0_i32_1 = arith.constant 0 : i32
    return %arg0, %c0_i32, %c0_i32_0 : i32, i32, i32
  }
  func.func @transform_1(%arg0: i32) -> (i32, i32, i32) {
    %c0_i32 = arith.constant 0 : i32
    %c0_i32_0 = arith.constant 0 : i32
    %c0_i32_1 = arith.constant 0 : i32
    return %arg0, %c0_i32, %c0_i32_0 : i32, i32, i32
  }
  func.func @transform_2(%arg0: i32) -> (i32, i32, i32) {
    %c0_i32 = arith.constant 0 : i32
    %c0_i32_0 = arith.constant 0 : i32
    %c0_i32_1 = arith.constant 0 : i32
    return %c0_i32, %arg0, %c0_i32_0 : i32, i32, i32
  }
  func.func @transform_3(%arg0: i32) -> (i32, i32, i32) {
    %c0_i32 = arith.constant 0 : i32
    %c0_i32_0 = arith.constant 0 : i32
    %c0_i32_1 = arith.constant 0 : i32
    return %c0_i32, %arg0, %c0_i32_0 : i32, i32, i32
  }
  func.func @transform_4(%arg0: i32) -> (i32, i32) {
    %c0_i32 = arith.constant 0 : i32
    %c0_i32_0 = arith.constant 0 : i32
    %c0_i32_1 = arith.constant 0 : i32
    return %c0_i32, %c0_i32_0 : i32, i32
  }
  func.func @transform_5(%arg0: i32) -> (i32, i32) {
    %c0_i32 = arith.constant 0 : i32
    %c0_i32_0 = arith.constant 0 : i32
    %c0_i32_1 = arith.constant 0 : i32
    return %c0_i32, %c0_i32_0 : i32, i32
  }
  func.func @transform_6(%arg0: i32) -> (i32, i32) {
    %c0_i32 = arith.constant 0 : i32
    %c0_i32_0 = arith.constant 0 : i32
    %c0_i32_1 = arith.constant 0 : i32
    return %c0_i32, %c0_i32_0 : i32, i32
  }
  func.func @transform_7(%arg0: i32) -> (i32, i32) {
    %c0_i32 = arith.constant 0 : i32
    %c0_i32_0 = arith.constant 0 : i32
    %c0_i32_1 = arith.constant 0 : i32
    return %c0_i32, %c0_i32_0 : i32, i32
  }
  func.func @transform_8(%arg0: i32) -> (i32, i32) {
    %c0_i32 = arith.constant 0 : i32
    %c0_i32_0 = arith.constant 0 : i32
    %c0_i32_1 = arith.constant 0 : i32
    return %c0_i32, %c0_i32_0 : i32, i32
  }
  func.func @transform_9(%arg0: i32) -> (i32, i32) {
    %c0_i32 = arith.constant 0 : i32
    %c0_i32_0 = arith.constant 0 : i32
    %c0_i32_1 = arith.constant 0 : i32
    return %c0_i32, %c0_i32_0 : i32, i32
  }
  func.func @transform_10(%arg0: i32) -> (i32, i32, i32) {
    %c0_i32 = arith.constant 0 : i32
    %c0_i32_0 = arith.constant 0 : i32
    %c0_i32_1 = arith.constant 0 : i32
    return %c0_i32, %arg0, %c0_i32_0 : i32, i32, i32
  }
  func.func @transform_11(%arg0: i32) -> (i32, i32, i32) {
    %c0_i32 = arith.constant 0 : i32
    %c0_i32_0 = arith.constant 0 : i32
    %c0_i32_1 = arith.constant 0 : i32
    return %c0_i32, %arg0, %c0_i32_0 : i32, i32, i32
  }
  func.func @transform_12(%arg0: i32) -> (i32, i32) {
    %c0_i32 = arith.constant 0 : i32
    %c0_i32_0 = arith.constant 0 : i32
    return %arg0, %c0_i32 : i32, i32
  }
}

</mosaic_0001>

<bundles_post_ra>
// kernel: tpu_custom_call.1
= control target key start
LH: loop header
LB: loop body
LE: loop exit
PB: predicated region body
PF: predicated region fallthrough
CT: control target
= control target key end

     0   :  { %18 = vsyncpa [#allocation3], 0  ;;  %s932_s0 = inlined_call_operand.vmem [shape: f32[2,8,32], index: 0, kind: input, shape index: {}]   ;;  %s933_s1 = inlined_call_operand.hbm [shape: f32[2,1,32], index: 1, kind: input, shape index: {}]   ;;  %s934_s2 = inlined_call_operand.hbm [shape: f32[1,2,32], index: 2, kind: input, shape index: {}]   ;;  %s935_s3 = inlined_call_operand.hbm [shape: f32[1,2,32], index: 3, kind: input, shape index: {}]   ;;  %s936_s4 = inlined_call_operand.vmem [shape: f32[32,10], index: 4, kind: input, shape index: {}]   ;;  %s937_s5 = inlined_call_operand.vmem [shape: f32[32,10], index: 5, kind: input, shape index: {}]   ;;  %s938_s6 = inlined_call_operand.vmem [shape: f32[1,10], index: 6, kind: input, shape index: {}]   ;;  %s939_s7 = inlined_call_operand.vmem [shape: f32[64,128], index: 7, kind: input, shape index: {}]   ;;  %s940_s8 = inlined_call_operand.hbm [shape: f32[32,128], index: 8, kind: input, shape index: {}]   ;;  %s941_s9 = inlined_call_operand.vmem [shape: f32[1,128], index: 9, kind: input, shape index: {}]   ;;  %s942_s10 = inlined_call_operand.hbm [shape: f32[1,2,32], index: 10, kind: output, shape index: {0}]   ;;  %s943_s11 = inlined_call_operand.hbm [shape: f32[1,2,32], index: 11, kind: output, shape index: {1}]   ;;  %s944_s12 = inlined_call_operand.hbm [shape: f32[2,8], index: 12, kind: output, shape index: {2}]  }
   0x1   :  { %19 = vsyncpa [#allocation6], 0 }
   0x2   :  { %20 = vsyncpa [#allocation9], 0 }
   0x3   :  { %21 = vsyncpa [#allocation4], 0  ;;  %s43_s23 = sshll.u32 %s934_s2, 4  ;;  %s44_s23 = int_to_ptr.hbm [resolvable:$true] %s43_s23 }
   0x4   :  { %22 = vsyncpa [#allocation12], 0  ;;  %s740_s24 = smov [#allocation5]   ;;  %s29_s28 = sshll.u32 %s933_s1, 4  ;;  %s30_s28 = int_to_ptr.hbm [resolvable:$true] %s29_s28 }
   0x5   :  { %s45_s25 = sshll.u32 %s740_s24, 4  ;;  %s741_s29 = smov [#allocation2]   ;;  %s46_s25 = int_to_ptr.vmem [resolvable:$true] %s45_s25 }
   0x6   :  { %48 = dma.hbm_to_vmem [thread:$0]  %s44_s23, 32, %s46_s25, [#allocation6]  }
   0x7   :  { %s31_s30 = sshll.u32 %s741_s29, 4  ;;  %s742_s13 = smov 16   ;;  %s32_s30 = int_to_ptr.vmem [resolvable:$true] %s31_s30 }
   0x8   :  { %s743_s14 = smov 1   ;;  %s54_s2 = sshll.u32 %s935_s3, 4  ;;  %s55_s2 = int_to_ptr.hbm [resolvable:$true] %s54_s2 }
   0x9   :  { %37 = dma.hbm_to_vmem [thread:$0]  %s30_s28, 32, %s32_s30, [#allocation3], %s742_s13, %s742_s13, %s743_s14  }
   0xa   :  { %s744_s17 = smov [#allocation7]   ;;  %s72_s1 = sshll.u32 %s940_s8, 4  ;;  %s73_s1 = int_to_ptr.hbm [resolvable:$true] %s72_s1 }
   0xb   :  { %s56_s18 = sshll.u32 %s744_s17, 4  ;;  %s745_s21 = smov [#allocation8]   ;;  %s57_s18 = int_to_ptr.vmem [resolvable:$true] %s56_s18 }
   0xc   :  { %59 = dma.hbm_to_vmem [thread:$0]  %s55_s2, 32, %s57_s18, [#allocation6]  }
   0xd   :  { %s74_s22 = sshll.u32 %s745_s21, 4  ;;  %s746_s23 = smov 128   ;;  %s75_s22 = int_to_ptr.vmem [resolvable:$true] %s74_s22 }
   0xe   :  { %s747_s24 = smov 8  }
   0xf   :  { %80 = dma.hbm_to_vmem [thread:$0]  %s73_s1, 512, %s75_s22, [#allocation9], %s746_s23, %s746_s23, %s747_s24  }
  0x10   :  { %730 = dma.done.wait [#allocation3], 32  }
  0x11   :  { %731 = vsyncadd [#allocation3], 4294967264 }
  0x12   :  { %732 = dma.done.wait [#allocation6], 64  }
  0x13   :  { %733 = vsyncadd [#allocation6], 4294967232 }
  0x14   :  { %734 = dma.done.wait [#allocation9], 512  }
  0x15   :  { %735 = vsyncadd [#allocation9], 4294966784  ;;  %v108_v0 = vld [vmem:[%s936_s4 + $0x18] sm:$0xff]  ;;  %v107_v2 = vld [vmem:[%s936_s4 + $0x10] sm:$0xff]  ;;  %vm109_vm0 = vcmask 261120   ;;  %vm182_vm1 = vcmask 80896   ;;  %v191_v27 = vlaneseq }
  0x16   :  { %v142_v1 = vld [vmem:[%s937_s5 + $0x18] sm:$0xff]  ;;  %128 = vmatpush.msra.mxu0 %v108_v0  ;;  %v141_v3 = vld [vmem:[%s937_s5 + $0x10] sm:$0xff]  ;;  %v106_v4 = vld [vmem:[%s936_s4 + $0x8] sm:$0xff]  ;;  %vm195_vm2 = vcmask 1041409   ;;  %vm198_vm3 = vcmask 58368   ;;  %v748_v34 = vmov 0  }
  0x17   :  { %158 = vmatpush.msra.mxu1 %v142_v1  ;;  %v140_v5 = vld [vmem:[%s937_s5 + $0x8] sm:$0xff]  ;;  %v99_v6 = vld [vmem:[%s932_s0] sm:$0xff]  ;;  %v871_v28 = vand.u32 127, %v191_v27  ;;  %538 = vset.pattern.permute.xlu2 %v748_v34  ;;  %vm268_vm12 = vcmask 64512   ;;  %s749_s17 = smov 64   ;;  %s750_s18 = smov 32  }
  0x18   :  { %129 = vmatpush.msra.mxu0 %v107_v2  ;;  %v100_v7 = vld [vmem:[%s932_s0 + $0x8] sm:$0xff]  ;;  %v105_v8 = vld [vmem:[%s936_s4] sm:$0xff]  ;;  %286 = vmatpush.msra.mxu2 %v99_v6  ;;  %s752_s19 = smov [#allocation11]   ;;  %s481_s22 = sshll.u32 %s943_s11, 4  ;;  %s482_s22 = int_to_ptr.hbm [resolvable:$true] %s481_s22 }
  0x19   :  { %159 = vmatpush.msra.mxu1 %v141_v3  ;;  %v139_v9 = vld [vmem:[%s937_s5] sm:$0xff]  ;;  %313 = vmatpush.msra.mxu3 %v100_v7  ;;  %v862_v10 = vld [vmem:[#allocation5] sm:$0x3]  ;;  %s479_s20 = sshll.u32 %s752_s19, 4  ;;  %s753_s0 = smov [#allocation13]   ;;  %s480_s20 = int_to_ptr.vmem [resolvable:$true] %s479_s20 }
  0x1a   :  { %130 = vmatpush.msra.mxu0 %v106_v4  ;;  %v540_v18 = vld [vmem:[%s938_s6] ss:$0 sm:$0xff]  ;;  %537 = vset.pattern.permute.xlu1 %v748_v34  ;;  %v383_v27 = vld [vmem:[#allocation8 + $0x18] sm:$0xff]  ;;  %s490_s4 = sshll.u32 %s753_s0, 4  ;;  %s492_s23 = sshll.u32 %s944_s12, 4  ;;  %s491_s4 = int_to_ptr.vmem [resolvable:$true] %s490_s4  ;;  %s493_s23 = int_to_ptr.hbm [resolvable:$true] %s492_s23 }
  0x1b   :  { %160 = vmatpush.msra.mxu1 %v140_v5  ;;  %539 = vset.pattern.permute.xlu0 %v748_v34  ;;  %s754_s11 = smov [#allocation10]   ;;  %s470_s26 = sshll.u32 %s942_s10, 4  ;;  %s471_s26 = int_to_ptr.hbm [resolvable:$true] %s470_s26 }
  0x1c   :  { %131 = vmatpush.msra.mxu0 %v105_v8  ;;  %s468_s24 = sshll.u32 %s754_s11, 4  ;;  %s469_s24 = int_to_ptr.vmem [resolvable:$true] %s468_s24 }
  0x1d   :  { %161 = vmatpush.msra.mxu1 %v139_v9  ;;  %513 = vmatmul.msk.f32.vlgmr.msra.gmra.mxu0 %vm109_vm0, %v99_v6 }
  0x1e   :  { %515 = vmatmul.msk.f32.vlgmr.msra.gmra.mxu1 %vm109_vm0, %v862_v10 }
  0x1f   :  { %396 = vmatpush.msrb.mxu1 %v383_v27 }
  0x25   :  { %514 = vmatmul.msk.f32.gmra.mxu0 %vm109_vm0, %v100_v7 }
  0x9a   :  { %v133_v11 = vpop.f32.mrf.mxu0 }
  0x9b   :  { %v163_v12 = vpop.f32.mrf.mxu1 }
  0x9c   :  { %v168_v13 = vperm.slane %v163_v12, 0  ;;  %v167_v14 = vrot.slane %v163_v12, 1  ;;  %v325_v12 = vld [vmem:[%s939_s7 + $0x38] sm:$0xff] }
  0x9d   :  { %346 = vmatpush.msrb.mxu2 %v325_v12 }
  0x9e   :  { %v172_v15 = vadd.f32 %v168_v13, %v133_v11  ;;  %v169_v16 = vperm.slane %v167_v14, 0  ;;  %v321_v13 = vld [vmem:[%s939_s7 + $0x18] sm:$0xff]  ;;  %v324_v14 = vld [vmem:[%s939_s7 + $0x30] sm:$0xff] }
  0x9f   :  { %372 = vmatpush.msrb.mxu3 %v321_v13  ;;  %347 = vmatpush.msrb.mxu2 %v324_v14 }
  0xa0   :  { %542 = vtanh.f32 %v172_v15  ;;  %v320_v15 = vld [vmem:[%s939_s7 + $0x10] sm:$0xff] }
  0xa1   :  { %373 = vmatpush.msrb.mxu3 %v320_v15 }
  0xa2   :  { %v136_v17 = vpop.f32.mrf.mxu0 }
  0xa3   :  { %v173_v19 = vadd.f32 %v169_v16, %v136_v17 }
  0xa5   :  { %544 = vtanh.f32 %v173_v19 }
  0xa6   :  { %v543_v20 = vpop.eup %542 }
  0xa7   :  { %v180_v21 = vmul.f32 %v543_v20, %v540_v18  ;;  %v103_v20 = vld [vmem:[#allocation2] sm:$0x1] }
  0xa8   :  { %328 = vst [vmem:[#allocation1] ss:$9 sm:$0xff] %v103_v20 }
  0xa9   :  { %v183_v22 = vsel %vm182_vm1, %v180_v21, 0.0  ;;  %v104_v21 = vld [vmem:[#allocation2 + $0x1] sm:$0x1] }
  0xaa   :  { %184 = vadd.xlane.f32.xlu0 %v183_v22  ;;  %330 = vst [vmem:[#allocation1 + $0x1] ss:$9 sm:$0xff] %v104_v21  ;;  %v323_v22 = vld [vmem:[%s939_s7 + $0x28] sm:$0xff] }
  0xab   :  { %v545_v23 = vpop.eup %544  ;;  %348 = vmatpush.msrb.mxu2 %v323_v22 }
  0xac   :  { %v181_v24 = vmul.f32 %v545_v23, %v540_v18  ;;  %v319_v23 = vld [vmem:[%s939_s7 + $0x8] sm:$0xff] }
  0xad   :  { %374 = vmatpush.msrb.mxu3 %v319_v23 }
  0xae   :  { %v186_v25 = vsel %vm182_vm1, %v181_v24, 0.0  ;;  %v322_v24 = vld [vmem:[%s939_s7 + $0x20] sm:$0xff]  ;;  %vm455_vm1 = vcmask 254976  }
  0xaf   :  { %349 = vmatpush.msrb.mxu2 %v322_v24 }
  0xb2   :  { %187 = vadd.xlane.f32.xlu0 %v186_v25  ;;  %v318_v25 = vld [vmem:[%s939_s7] sm:$0xff] }
  0xb3   :  { %375 = vmatpush.msrb.mxu3 %v318_v25 }
 0x11d   :  { %v185_v26 = vpop.xlane.xlu0 %184 }
 0x11e   :  { %v193_v30 = vperm.slane %v185_v26, %v871_v28 }
 0x125   :  { %v188_v29 = vpop.xlane.xlu0 %187 }
 0x126   :  { %v194_v31 = vperm.slane %v188_v29, %v871_v28 }
 0x128   :  { %v196_v32 = vsel %vm195_vm2, %v194_v31, %v193_v30  ;;  %v380_v30 = vld [vmem:[#allocation8] sm:$0xff] }
 0x129   :  { %v199_v33 = vsel %vm198_vm3, %v196_v32, -inf  ;;  %462 = vst.msk [vmem:[#allocation13] sm:$0x3] %vm198_vm3, %v196_v32 }
 0x12a   :  { %200 = vmax.xlane.f32.xlu1 %v199_v33 }
 0x19d   :  { %v201_v35 = vpop.xlane.xlu1 %200 }
 0x19e   :  { %v203_v36 = vperm.slane %v201_v35, 0  ;;  %v204_v37 = vperm.slane %v201_v35, 1 }
 0x1a0   :  { %v207_v38 = vsub.f32 %v185_v26, %v203_v36  ;;  %v208_v39 = vsub.f32 %v188_v29, %v204_v37  ;;  %v331_v26 = vld [vmem:[#allocation1] sm:$0xff]  ;;  %v381_v29 = vld [vmem:[#allocation8 + $0x8] sm:$0xff] }
 0x1a2   :  { %v209_v40 = vmul.f32 1.442695, %v207_v38  ;;  %v211_v41 = vmul.f32 1.442695, %v208_v39  ;;  %v541_v39 = vld [vmem:[%s941_s9] ss:$0 sm:$0xff] }
 0x1a3   :  { %s751_s9 = smov 96  }
 0x1a4   :  { %546 = vpow2.f32 %v209_v40 }
 0x1a5   :  { %548 = vpow2.f32 %v211_v41 }
 0x1aa   :  { %v547_v42 = vpop.eup %546 }
 0x1ab   :  { %v549_v43 = vpop.eup %548  ;;  %216 = vperm.xlu1 %537, %v547_v42  }
 0x1ac   :  { %219 = vperm.xlu2 %538, %v549_v43  }
 0x206   :  { %v220_v44 = vpop.permute.xlu2 %219 }
 0x207   :  { %v222_v46 = vperm.slane %v220_v44, %v871_v28 }
 0x21d   :  { %v217_v45 = vpop.permute.xlu1 %216 }
 0x21e   :  { %v221_v47 = vperm.slane %v217_v45, %v871_v28 }
 0x220   :  { %v223_v48 = vsel %vm195_vm2, %v222_v46, %v221_v47 }
 0x221   :  { %v225_v49 = vsel %vm198_vm3, %v223_v48, 0.0 }
 0x222   :  { %226 = vadd.xlane.f32.xlu2 %v225_v49 }
 0x295   :  { %v227_v50 = vpop.xlane.xlu2 %226 }
 0x296   :  { %v229_v51 = vperm.slane %v227_v50, 0  ;;  %v230_v52 = vperm.slane %v227_v50, 1 }
 0x298   :  { %550 = vrcp.f32 %v229_v51  ;;  %v244_v59 = vand.u32 2147483648, %v229_v51  ;;  %v259_v60 = vand.u32 2147483648, %v230_v52  ;;  %v242_v62 = vand.u32 2147483647, %v229_v51 }
 0x299   :  { %552 = vrcp.f32 %v230_v52  ;;  %v257_v0 = vand.u32 2147483647, %v230_v52  ;;  %vm238_vm6 = vweird.f32 %v229_v51  ;;  %vm253_vm7 = vweird.f32 %v230_v52 }
 0x29a   :  { %v245_v3 = vor.u32 1.1754944e-38, %v244_v59  ;;  %v260_v4 = vor.u32 1.1754944e-38, %v259_v60  ;;  %vm243_vm10 = vcmp.eq.f32.partialorder %v242_v62, 8.507059e+37 }
 0x29b   :  { %vm258_vm11 = vcmp.eq.f32.partialorder %v257_v0, 8.507059e+37 }
 0x29e   :  { %v551_v53 = vpop.eup %550 }
 0x29f   :  { %v553_v54 = vpop.eup %552  ;;  %v234_v55 = vmul.f32 %v551_v53, %v229_v51  ;;  %vm239_vm4 = vweird.f32 %v551_v53 }
 0x2a0   :  { %v249_v56 = vmul.f32 %v553_v54, %v230_v52  ;;  %vm254_vm5 = vweird.f32 %v553_v54  ;;  %vm240_vm8 = vmor %vm238_vm6, %vm239_vm4 }
 0x2a1   :  { %v235_v57 = vsub.f32 1.0, %v234_v55  ;;  %vm255_vm9 = vmor %vm253_vm7, %vm254_vm5 }
 0x2a2   :  { %v250_v58 = vsub.f32 1.0, %v249_v56 }
 0x2a3   :  { %v236_v61 = vmul.f32 %v551_v53, %v235_v57 }
 0x2a4   :  { %v251_v63 = vmul.f32 %v553_v54, %v250_v58 }
 0x2a5   :  { %v237_v1 = vadd.f32 %v551_v53, %v236_v61 }
 0x2a6   :  { %v252_v2 = vadd.f32 %v553_v54, %v251_v63 }
 0x2a7   :  { %v241_v5 = vsel %vm240_vm8, %v551_v53, %v237_v1 }
 0x2a8   :  { %v256_v6 = vsel %vm255_vm9, %v553_v54, %v252_v2  ;;  %v246_v7 = vsel %vm243_vm10, %v245_v3, %v241_v5 }
 0x2a9   :  { %v261_v8 = vsel %vm258_vm11, %v260_v4, %v256_v6  ;;  %v247_v9 = vmul.f32 %v547_v42, %v246_v7 }
 0x2aa   :  { %v262_v11 = vmul.f32 %v549_v43, %v261_v8 }
 0x2ab   :  { %265 = vperm.xlu1 %537, %v247_v9  }
 0x2ac   :  { %293 = vperm.xlu0 %539, %v262_v11  }
 0x31d   :  { %v266_v16 = vpop.permute.xlu1 %265 }
 0x31e   :  { %v294_v17 = vpop.permute.xlu0 %293  ;;  %v267_v18 = vperm.slane %v266_v16, %v871_v28 }
 0x31f   :  { %v295_v19 = vperm.slane %v294_v17, %v871_v28  ;;  %v382_v28 = vld [vmem:[#allocation8 + $0x10] sm:$0xff] }
 0x320   :  { %516 = vmatmul.msk.f32.vlgmr.msra.gmra.mxu2 %vm268_vm12, %v267_v18  ;;  %397 = vmatpush.msrb.mxu1 %v382_v28 }
 0x321   :  { %517 = vmatmul.msk.f32.vlgmr.msra.gmra.mxu3 %vm268_vm12, %v295_v19 }
 0x322   :  { %398 = vmatpush.msrb.mxu1 %v381_v29 }
 0x324   :  { %399 = vmatpush.msrb.mxu1 %v380_v30 }
 0x325   :  { %520 = vmatmul.msk.f32.vlgmr.msrb.gmra.mxu1 %vm109_vm0, %v862_v10  ;;  %v102_v10 = vld [vmem:[#allocation7] sm:$0x3] }
 0x328   :  { %518 = vmatmul.msk.f32.vlgmr.msrb.gmra.mxu2 %vm109_vm0, %v331_v26 }
 0x3a2   :  { %v401_v37 = vpop.f32.mrf.mxu1 }
 0x3a3   :  { %v288_v33 = vpop.f32.mrf.mxu2 }
 0x3a4   :  { %v315_v31 = vpop.f32.mrf.mxu3 }
 0x3a5   :  { %v356_v32 = vrot.slane %v315_v31, 7 }
 0x3a7   :  { %v357_v34 = vsel %vm195_vm2, %v356_v32, %v288_v33 }
 0x3a8   :  { %519 = vmatmul.msk.f32.vlgmr.msrb.gmra.mxu3 %vm109_vm0, %v357_v34 }
 0x3ab   :  { %v351_v35 = vpop.f32.mrf.mxu2 }
 0x42b   :  { %v377_v36 = vpop.f32.mrf.mxu3 }
 0x42c   :  { %v378_v38 = vadd.f32 %v377_v36, %v351_v35 }
 0x42e   :  { %v404_v40 = vadd.f32 %v401_v37, %v378_v38 }
 0x430   :  { %v409_v41 = vadd.f32 %v541_v39, %v404_v40 }
 0x432   :  { %554 = vtanh.f32 %v409_v41  ;;  %v521_v43 = vmul.f32 -1.442695, %v409_v41 }
 0x434   :  { %556 = vpow2.f32 %v521_v43 }
 0x438   :  { %v555_v42 = vpop.eup %554 }
 0x439   :  { %436 = vrot.lane.b32.xlu1 %v555_v42, %s749_s17 }
 0x43a   :  { %v557_v44 = vpop.eup %556 }
 0x43b   :  { %v413_v45 = vadd.f32 1.0, %v557_v44 }
 0x43d   :  { %558 = vrcp.f32 %v413_v45  ;;  %v425_v51 = vand.u32 2147483648, %v413_v45  ;;  %vm419_vm14 = vweird.f32 %v413_v45  ;;  %v423_v52 = vand.u32 2147483647, %v413_v45 }
 0x43f   :  { %v426_v54 = vor.u32 1.1754944e-38, %v425_v51  ;;  %vm424_vm0 = vcmp.eq.f32.partialorder %v423_v52, 8.507059e+37 }
 0x441   :  { %431 = vrot.lane.b32.xlu1 %v102_v10, %s750_s18 }
 0x443   :  { %v559_v46 = vpop.eup %558 }
 0x444   :  { %v415_v47 = vmul.f32 %v559_v46, %v413_v45  ;;  %vm420_vm13 = vweird.f32 %v559_v46 }
 0x445   :  { %vm421_vm15 = vmor %vm419_vm14, %vm420_vm13 }
 0x446   :  { %v416_v48 = vsub.f32 1.0, %v415_v47 }
 0x448   :  { %v417_v49 = vmul.f32 %v559_v46, %v416_v48 }
 0x44a   :  { %v418_v50 = vadd.f32 %v559_v46, %v417_v49 }
 0x44c   :  { %v422_v53 = vsel %vm421_vm15, %v559_v46, %v418_v50 }
 0x44d   :  { %v427_v56 = vsel %vm424_vm0, %v426_v54, %v422_v53 }
 0x4ab   :  { %v437_v55 = vpop.permute.xlu1 %436 }
 0x4ac   :  { %v439_v57 = vmul.f32 %v437_v55, %v427_v56 }
 0x4ae   :  { %441 = vrot.lane.b32.xlu2 %v439_v57, %s750_s18 }
 0x4b3   :  { %v432_v58 = vpop.permute.xlu1 %431 }
 0x4b4   :  { %v434_v59 = vmul.f32 %v432_v58, %v427_v56 }
 0x508   :  { %v442_v60 = vpop.permute.xlu2 %441 }
 0x509   :  { %v444_v61 = vadd.f32 %v442_v60, %v434_v59 }
 0x50b   :  { %560 = vtanh.f32 %v444_v61  ;;  %458 = vrot.lane.b32.xlu1 %v444_v61, %s751_s9 }
 0x511   :  { %v561_v62 = vpop.eup %560 }
 0x512   :  { %447 = vrot.lane.b32.xlu0 %v561_v62, %s749_s17 }
 0x57d   :  { %v459_v63 = vpop.permute.xlu1 %458 }
 0x57e   :  { %461 = vst.msk [vmem:[#allocation11] sm:$0x3] %vm455_vm1, %v459_v63 }
 0x57f   :  { %484 = dma.vmem_to_hbm [thread:$0]  %s480_s20, 32, %s482_s22, [#allocation12]  }
 0x580   :  { %495 = dma.vmem_to_hbm [thread:$0]  %s491_s4, 32, %s493_s23, [#allocation12]  }
 0x584   :  { %v448_v0 = vpop.permute.xlu0 %447 }
 0x585   :  { %v450_v1 = vmul.f32 %v448_v0, %v427_v56 }
 0x587   :  { %452 = vrot.lane.b32.xlu0 %v450_v1, %s750_s18 }
 0x5f9   :  { %v453_v2 = vpop.permute.xlu0 %452 }
 0x5fa   :  { %456 = vst.msk [vmem:[#allocation10] sm:$0x3] %vm455_vm1, %v453_v2 }
 0x5fb   :  { %473 = dma.vmem_to_hbm [thread:$0]  %s469_s24, 32, %s471_s26, [#allocation4]  }
 0x5fc   :  { %736 = dma.done.wait [#allocation4], 32  }
 0x5fd   :  { %737 = vsyncadd [#allocation4], 4294967264 }
 0x5fe   :  { %738 = dma.done.wait [#allocation12], 64  }
 0x5ff   :  { %739 = vsyncadd [#allocation12], 4294967232 }
 0x600   :  { %508 = vsyncpa [#allocation3], 1 }
 0x601   :  { %509 = vsyncpa [#allocation6], 1 }
 0x602   :  { %510 = vsyncpa [#allocation9], 1 }
 0x603   :  { %511 = vsyncpa [#allocation4], 1 }
 0x604   :  { %512 = vsyncpa [#allocation12], 1 }

</bundles_post_ra>
